<compile_context>
chip_gen: v7x
topology: tpu7x:2x2x1
jax: 0.10.0
libtpu: 0.0.40
codegen_flags: <defaults>
</compile_context>

<pallas_src>
import functools

import jax
import jax.numpy as jnp
from jax.experimental import pallas as pl
from jax.experimental.pallas import tpu as pltpu


def final_layer_kernel(x_ref, mod_ref, w_ref, b_ref, o_ref, *, compute_dtype):
    # x_ref:   (Nbt, L, D)
    # mod_ref: (Nbt, 2, D)   [row 0: shift, row 1: (1 + scale), prefolded in wrapper]
    # w_ref:   (D, O)  bf16  b_ref: (1, O) f32
    # o_ref:   (Nbt*L, O)
    nbt, L, D = x_ref.shape

    x32 = x_ref[...].astype(jnp.float32)

    # One-pass LayerNorm statistics in f32 (eps=1e-6, no affine).
    mean = jnp.mean(x32, axis=-1, keepdims=True)                 # (Nbt, L, 1)
    ex2 = jnp.mean(x32 * x32, axis=-1, keepdims=True)
    var = jnp.maximum(ex2 - mean * mean, 0.0)                    # guard cancellation
    r = jax.lax.rsqrt(var + 1e-6)                                # EUP

    # Modulate chain in compute_dtype (bf16 on v6e/v7x, f32 on v5e/older).
    cd = compute_dtype
    shift = mod_ref[:, 0:1, :].astype(cd)                        # (Nbt, 1, D)
    scale1p = mod_ref[:, 1:2, :].astype(cd)                      # 1 + scale
    xn = (x32.astype(cd) - mean.astype(cd)) * r.astype(cd)       # (Nbt, L, D)
    mod = xn * scale1p + shift

    # Final linear on the MXU with a well-filled M dimension; bf16 operands,
    # f32 accumulation. (nbt*L) % 8 == 0 -> the reshape is a free sublane collapse.
    mod2d = mod.reshape(nbt * L, D).astype(w_ref.dtype)
    out = jnp.dot(mod2d, w_ref[...], preferred_element_type=jnp.float32)
    out = out + b_ref[...].astype(jnp.float32)
    o_ref[...] = out.astype(o_ref.dtype)


def _device_config():
    """Pick elementwise dtype / tile target / scoped-VMEM limit per TPU generation."""
    try:
        kind = jax.devices()[0].device_kind.lower()
    except Exception:  # pragma: no cover - defensive default
        kind = ""
    if "v7" in kind:
        # 64 MiB physical VMEM, 2 TCs: smaller even-count tiles, modest scoped limit.
        return dict(compute_dtype=jnp.bfloat16, target_rows=256,
                    vmem_bytes=32 * 1024 * 1024)
    if "v6" in kind:
        return dict(compute_dtype=jnp.bfloat16, target_rows=1024,
                    vmem_bytes=64 * 1024 * 1024)
    if "v5" in kind:
        # v5e has no bf16 VALU: keep elementwise math in f32, go bigger on tiles.
        return dict(compute_dtype=jnp.float32, target_rows=1024,
                    vmem_bytes=64 * 1024 * 1024)
    # Unknown / older generations: conservative defaults.
    return dict(compute_dtype=jnp.float32, target_rows=512,
                vmem_bytes=32 * 1024 * 1024)


def _pick_block_rows(bt, L, target_rows):
    """Largest divisor Nbt of BT with Nbt*L <= target_rows and (Nbt*L) % 8 == 0.
    Prefer an EVEN number of grid steps (balanced across v7x's 2 TensorCores),
    then >=2 steps so double-buffering has work to hide."""
    cands = [n for n in range(1, bt + 1)
             if bt % n == 0 and n * L <= target_rows and (n * L) % 8 == 0]
    if not cands:
        # TODO(synk): single full-size block disables pipelining + megacore split;
        # pad BT/L upstream for production shapes instead of hitting this path.
        return bt
    even = [n for n in cands if (bt // n) % 2 == 0]
    if even:
        return max(even)
    multi = [n for n in cands if bt // n >= 2]
    return max(multi) if multi else max(cands)


@jax.jit
def final_layer_forward(x, c, w_ada, b_ada, w_out, b_out):
    """
    x: (B, T, L, D), c: (B, T, D)
    w_ada: (D, 2D), b_ada: (2D,)   [already (in, out) vs. torch Linear]
    w_out: (D, O),  b_out: (O,)
    returns: (B, T, L, O)
    """
    B, T, L, D = x.shape
    O = w_out.shape[1]
    BT = B * T
    cfg = _device_config()

    # --- adaLN hoisted to one XLA matmul; fold the "+1" into scale here. ---
    c32 = c.reshape(BT, D).astype(jnp.float32)
    ada = jax.nn.silu(c32) @ w_ada.astype(jnp.float32) + b_ada.astype(jnp.float32)
    shift = ada[:, :D]
    scale1p = 1.0 + ada[:, D:]
    mod_params = jnp.stack([shift, scale1p], axis=1)             # (BT, 2, D) f32

    # --- MXU operands in bf16 regardless of input dtype (f32 matmul is slow on
    #     every generation, and this halves the constant weight DMA/VMEM). ---
    w_mxu = w_out.astype(jnp.bfloat16)                           # (D, O)
    b_row = b_out.reshape(1, O).astype(jnp.float32)              # (1, O)

    nbt = _pick_block_rows(BT, L, cfg["target_rows"])
    grid = (BT // nbt,)
    x3 = x.reshape(BT, L, D)

    kernel = functools.partial(final_layer_kernel,
                               compute_dtype=cfg["compute_dtype"])

    out = pl.pallas_call(
        kernel,
        out_shape=jax.ShapeDtypeStruct((BT * L, O), x.dtype),
        grid_spec=pltpu.PrefetchScalarGridSpec(
            num_scalar_prefetch=0,
            grid=grid,
            in_specs=[
                pl.BlockSpec((nbt, L, D), lambda i: (i, 0, 0)),   # x rows
                pl.BlockSpec((nbt, 2, D), lambda i: (i, 0, 0)),   # merged shift/1+scale
                pl.BlockSpec((D, O), lambda i: (0, 0)),           # w_out (constant idx)
                pl.BlockSpec((1, O), lambda i: (0, 0)),           # b_out (constant idx)
            ],
            # Unpadded output: last block dim == full O, rows are a multiple of 8.
            out_specs=pl.BlockSpec((nbt * L, O), lambda i: (i, 0)),
        ),
        compiler_params=pltpu.CompilerParams(
            dimension_semantics=("parallel",),
            vmem_limit_bytes=cfg["vmem_bytes"],
        ),
    )(x3, mod_params, w_mxu, b_row)

    return out.reshape(B, T, L, O)


def reference_forward(x, c, w_ada, b_ada, w_out, b_out):
    """Plain-JAX reference matching the PyTorch module semantics (all f32)."""
    c32 = c.astype(jnp.float32)
    ada = jax.nn.silu(c32) @ w_ada + b_ada                       # (B, T, 2D)
    D = x.shape[-1]
    shift, scale = ada[..., :D], ada[..., D:]
    x32 = x.astype(jnp.float32)
    mean = jnp.mean(x32, axis=-1, keepdims=True)
    var = jnp.mean((x32 - mean) ** 2, axis=-1, keepdims=True)
    xn = (x32 - mean) * jax.lax.rsqrt(var + 1e-6)
    mod = xn * (1 + scale[:, :, None, :]) + shift[:, :, None, :]
    return (mod @ w_out + b_out).astype(x.dtype)


if __name__ == "__main__":
    # Small shapes consistent with the module.
    B, T, L = 2, 4, 8
    hidden_size = 32
    patch_size = 2
    out_channels = 4
    O = patch_size * patch_size * out_channels  # 16

    key = jax.random.PRNGKey(0)
    kx, kc, kw1, kb1, kw2, kb2 = jax.random.split(key, 6)

    x = jax.random.normal(kx, (B, T, L, hidden_size), dtype=jnp.float32)
    c = jax.random.normal(kc, (B, T, hidden_size), dtype=jnp.float32)

    w_ada = jax.random.normal(kw1, (hidden_size, 2 * hidden_size), dtype=jnp.float32) * 0.02
    b_ada = jax.random.normal(kb1, (2 * hidden_size,), dtype=jnp.float32) * 0.02
    w_out = jax.random.normal(kw2, (hidden_size, O), dtype=jnp.float32) * 0.02
    b_out = jax.random.normal(kb2, (O,), dtype=jnp.float32) * 0.02

    y = final_layer_forward(x, c, w_ada, b_ada, w_out, b_out)
    y = jax.block_until_ready(y)

    y_ref = reference_forward(x, c, w_ada, b_ada, w_out, b_out)
    assert y.shape == (B, T, L, O), y.shape
    # Tolerance accommodates bf16 MXU operands (and bf16 modulate on v6e/v7x)
    # against the all-f32 reference.
    max_err = float(jnp.max(jnp.abs(y - y_ref)))
    assert max_err < 2e-2, max_err

    print("KERNEL_OK")
</pallas_src>

<mosaic_0001>
module attributes {stable_mosaic.version = 11 : i64} {
  func.func @final_layer_kernel(%arg0: i32, %arg1: memref<4x8x32xf32, #tpu.memory_space<vmem>>, %arg2: memref<4x2x32xf32, #tpu.memory_space<vmem>>, %arg3: memref<32x16xbf16, #tpu.memory_space<vmem>>, %arg4: memref<1x16xf32, #tpu.memory_space<vmem>>, %arg5: memref<32x16xf32, #tpu.memory_space<vmem>>) attributes {dimension_semantics = [#tpu.dimension_semantics<parallel>], iteration_bounds = array<i64: 2>, scalar_prefetch = 0 : i64, scratch_operands = 0 : i64, tpu.core_type = #tpu.core_type<tc>, window_params = [{transform_indices = @transform_0, window_bounds = array<i64: 4, 8, 32>}, {transform_indices = @transform_1, window_bounds = array<i64: 4, 2, 32>}, {pipeline_mode = #tpu.pipeline_mode<synchronous>, transform_indices = @transform_2, window_bounds = array<i64: 32, 16>}, {pipeline_mode = #tpu.pipeline_mode<synchronous>, transform_indices = @transform_3, window_bounds = array<i64: 1, 16>}, {transform_indices = @transform_4, window_bounds = array<i64: 32, 16>}]} {
    %c0 = arith.constant 0 : index
    %c0_0 = arith.constant 0 : index
    %c0_1 = arith.constant 0 : index
    %0 = vector.load %arg1[%c0, %c0_0, %c0_1] : memref<4x8x32xf32, #tpu.memory_space<vmem>>, vector<4x8x32xf32>
    %cst = arith.constant dense<0.000000e+00> : vector<4x8xf32>
    %1 = vector.multi_reduction <add>, %0, %cst [2] : vector<4x8x32xf32> to vector<4x8xf32>
    %2 = vector.shape_cast %1 : vector<4x8xf32> to vector<4x8x1xf32>
    %cst_2 = arith.constant 3.200000e+01 : f32
    %3 = vector.broadcast %cst_2 : f32 to vector<4x8x1xf32>
    %4 = arith.divf %2, %3 : vector<4x8x1xf32>
    %5 = arith.mulf %0, %0 : vector<4x8x32xf32>
    %cst_3 = arith.constant dense<0.000000e+00> : vector<4x8xf32>
    %6 = vector.multi_reduction <add>, %5, %cst_3 [2] : vector<4x8x32xf32> to vector<4x8xf32>
    %7 = vector.shape_cast %6 : vector<4x8xf32> to vector<4x8x1xf32>
    %cst_4 = arith.constant 3.200000e+01 : f32
    %8 = vector.broadcast %cst_4 : f32 to vector<4x8x1xf32>
    %9 = arith.divf %7, %8 : vector<4x8x1xf32>
    %10 = arith.mulf %4, %4 : vector<4x8x1xf32>
    %11 = arith.subf %9, %10 : vector<4x8x1xf32>
    %cst_5 = arith.constant 0.000000e+00 : f32
    %12 = vector.broadcast %cst_5 : f32 to vector<4x8x1xf32>
    %13 = arith.maximumf %11, %12 : vector<4x8x1xf32>
    %cst_6 = arith.constant 9.99999997E-7 : f32
    %14 = vector.broadcast %cst_6 : f32 to vector<4x8x1xf32>
    %15 = arith.addf %13, %14 : vector<4x8x1xf32>
    %16 = math.rsqrt %15 : vector<4x8x1xf32>
    %c0_7 = arith.constant 0 : index
    %c0_8 = arith.constant 0 : index
    %c0_9 = arith.constant 0 : index
    %17 = vector.load %arg2[%c0_7, %c0_8, %c0_9] : memref<4x2x32xf32, #tpu.memory_space<vmem>>, vector<4x1x32xf32>
    %c0_10 = arith.constant 0 : index
    %c1 = arith.constant 1 : index
    %c0_11 = arith.constant 0 : index
    %18 = vector.load %arg2[%c0_10, %c1, %c0_11] : memref<4x2x32xf32, #tpu.memory_space<vmem>>, vector<4x1x32xf32>
    %19 = vector.broadcast %4 : vector<4x8x1xf32> to vector<4x8x32xf32>
    %20 = arith.subf %0, %19 : vector<4x8x32xf32>
    %21 = vector.broadcast %16 : vector<4x8x1xf32> to vector<4x8x32xf32>
    %22 = arith.mulf %20, %21 : vector<4x8x32xf32>
    %23 = vector.broadcast %18 : vector<4x1x32xf32> to vector<4x8x32xf32>
    %24 = arith.mulf %22, %23 : vector<4x8x32xf32>
    %25 = vector.broadcast %17 : vector<4x1x32xf32> to vector<4x8x32xf32>
    %26 = arith.addf %24, %25 : vector<4x8x32xf32>
    %27 = vector.shape_cast %26 : vector<4x8x32xf32> to vector<32x32xf32>
    %28 = arith.truncf %27 : vector<32x32xf32> to vector<32x32xbf16>
    %c0_12 = arith.constant 0 : index
    %c0_13 = arith.constant 0 : index
    %29 = vector.load %arg3[%c0_12, %c0_13] : memref<32x16xbf16, #tpu.memory_space<vmem>>, vector<32x16xbf16>
    %cst_14 = arith.constant dense<0.000000e+00> : vector<32x16xf32>
    %30 = tpu.matmul %28, %29, %cst_14 {dimension_numbers = #tpu.dot_dimension_numbers<[1], [0], [0], [1], [0, 0, 1, 1], [], []>} : vector<32x32xbf16>, vector<32x16xbf16>, vector<32x16xf32> -> vector<32x16xf32>
    %c0_15 = arith.constant 0 : index
    %c0_16 = arith.constant 0 : index
    %31 = vector.load %arg4[%c0_15, %c0_16] : memref<1x16xf32, #tpu.memory_space<vmem>>, vector<1x16xf32>
    %32 = vector.broadcast %31 : vector<1x16xf32> to vector<32x16xf32>
    %33 = arith.addf %30, %32 : vector<32x16xf32>
    %c0_17 = arith.constant 0 : index
    %c0_18 = arith.constant 0 : index
    %34 = vector.load %arg5[%c0_17, %c0_18] : memref<32x16xf32, #tpu.memory_space<vmem>>, vector<32x16xf32>
    tpu.vector_store %arg5[%c0_17, %c0_18], %33 {strides = array<i32>} : memref<32x16xf32, #tpu.memory_space<vmem>>, vector<32x16xf32>,
    return
  }
  func.func @transform_0(%arg0: i32) -> (i32, i32, i32) {
    %c0_i32 = arith.constant 0 : i32
    %c0_i32_0 = arith.constant 0 : i32
    %c0_i32_1 = arith.constant 0 : i32
    return %arg0, %c0_i32, %c0_i32_0 : i32, i32, i32
  }
  func.func @transform_1(%arg0: i32) -> (i32, i32, i32) {
    %c0_i32 = arith.constant 0 : i32
    %c0_i32_0 = arith.constant 0 : i32
    %c0_i32_1 = arith.constant 0 : i32
    return %arg0, %c0_i32, %c0_i32_0 : i32, i32, i32
  }
  func.func @transform_2(%arg0: i32) -> (i32, i32) {
    %c0_i32 = arith.constant 0 : i32
    %c0_i32_0 = arith.constant 0 : i32
    %c0_i32_1 = arith.constant 0 : i32
    return %c0_i32, %c0_i32_0 : i32, i32
  }
  func.func @transform_3(%arg0: i32) -> (i32, i32) {
    %c0_i32 = arith.constant 0 : i32
    %c0_i32_0 = arith.constant 0 : i32
    %c0_i32_1 = arith.constant 0 : i32
    return %c0_i32, %c0_i32_0 : i32, i32
  }
  func.func @transform_4(%arg0: i32) -> (i32, i32) {
    %c0_i32 = arith.constant 0 : i32
    %c0_i32_0 = arith.constant 0 : i32
    return %arg0, %c0_i32 : i32, i32
  }
}

</mosaic_0001>

<bundles_post_ra>
// kernel: final_layer_forward.1
= control target key start
LH: loop header
LB: loop body
LE: loop exit
PB: predicated region body
PF: predicated region fallthrough
CT: control target
= control target key end

     0   :  { %9 = vsyncpa [#allocation3], 0  ;;  %s852_s0 = inlined_call_operand.vmem [shape: f32[8,8,32], index: 0, kind: input, shape index: {}]   ;;  %s853_s1 = inlined_call_operand.vmem [shape: f32[8,2,32], index: 1, kind: input, shape index: {}]   ;;  %s854_s2 = inlined_call_operand.vmem [shape: bf16[32,16], index: 2, kind: input, shape index: {}]   ;;  %s855_s3 = inlined_call_operand.vmem [shape: f32[1,16], index: 3, kind: input, shape index: {}]   ;;  %s856_s4 = inlined_call_operand.hbm [shape: f32[64,16], index: 4, kind: output, shape index: {}]  }
   0x1   :  { %11 = vsyncpa [#allocation3 + $0x1], 0  ;;  %s696_s15 = smov 0   ;;  %s698_s16 = smov 0  }
   0x2   :  { %s700_s17 = smov 0   ;;  %s702_s18 = smov 0  }
   0x3 LB: > { %s717_s19 = sadd.s32 4294967295, %s666_s18   ;;  %s513_s20 = sadd.s32 4294967294, %s666_s18   ;;  %s666_s18 = sphi %s702_s18, %s862_s18   ;;  %s662_s17 = sphi %s700_s17, %s861_s17   ;;  %s658_s16 = sphi %s698_s16, %s860_s16   ;;  %s654_s15 = sphi %s696_s15, %s859_s15  }
   0x4   : > { %s721_s21 = sadd.s32 1, %s666_s18   ;;  %s118_s22 = sadd.s32 1, %s662_s17 }
   0x5   : > { %s115_s23 = ssub.s32 %s666_s18, %s721_s21  ;;  %p128_p0 = scmp.ne.s32.totalorder %s662_s17, %s658_s16 }
   0x6   : > { %p116_p1 = scmp.eq.s32.totalorder %s115_s23, 0  ;;  %p129_p2 = scmp.eq.s32.totalorder %s717_s19, 1 }
   0x7   : > { %p134_p3 = scmp.ne.s32.totalorder %s658_s16, %s654_s15  ;;  %p135_p4 = scmp.eq.s32.totalorder %s513_s20, 1 }
   0x8   : > { %s732_s24 = scalar_select %p116_p1, %s662_s17, %s118_s22  }
   0x9   : > { %p734_p5 = por %p129_p2, %p128_p0  ;;  %p738_p6 = por %p135_p4, %p134_p3 }
   0xa   : > { %p516_p7 = scmp.ge.s32.totalorder %s666_s18, 1  ;;  %p177_p8 = scmp.lt.s32.totalorder %s666_s18, 3 }
   0xc   : > { %p178_p9 = pnand %p516_p7, %p177_p8 }
   0xd   : > { %s518_s27 = sshll.u32 (!%p178_p9), %s717_s19, 2  ;;  %vm226_vm0 = vcmask (!%p178_p9), 261120   ;;  %v594_v16 = vld [vmem:[%s854_s2] sm:$0xff] (!%p178_p9)   ;;  %v595_v17 = vld [vmem:[%s854_s2 + $0x8] sm:$0xff] (!%p178_p9)   ;;  %s205_s14 = sand.u32 (!%p178_p9), 1, %s658_s16   ;;  %vm420_vm1 = vcmask (!%p178_p9), 130048  }
   0xe   : > { %181 = sbr.rel (%p178_p9) target bundleno = 440 (0x1b8), region = 36  ;;  %p209_p10 = scmp.lt.s32.totalorder (!%p178_p9), %s518_s27, 7  ;;  %545 = vmatprep.subr.bf16.mxu0 (!%p178_p9), %v594_v16 }
   0xf   : > { %546 = vmatpush3.bf16.msra.mxu0 (!%p178_p9), %v594_v16  ;;  %s517_s20 = sshll.u32 (!%p178_p9), %s205_s14, 5  ;;  %v530_v16 = vld [vmem:[%s855_s3] ss:$0 sm:$0xff] (!%p178_p9)  ;;  %s540_s29 = sshll.u32 (!%p178_p9), %s717_s19, 9 }
  0x10   : > { %547 = vmatprep.subr.bf16.mxu0 (!%p178_p9), %v595_v17  ;;  %s806_s6 = scalar_lea.hbm (!%p178_p9), %s856_s4, %s540_s29  ;;  %s811_s19 = scalar_lea.sflag (!%p178_p9), [#allocation3], %s205_s14 }
  0x11   : > { %s668_s8 = smov (!%p178_p9), [#allocation2]  }
  0x12   : > { %s608_s9 = sshll.u32 (!%p178_p9), %s668_s8, 4  ;;  %s609_s9 = int_to_ptr.vmem [resolvable:$false] %s608_s9 }
  0x13   : > { %548 = vmatpush3.bf16.msra.mxu0 (!%p178_p9), %v595_v17 }
  0x15   : > { %s864_s27 = smov (!%p209_p10, %s518_s27), 7 }
  0x16   : > { %s519_s28 = sshll.u32 %s864_s27, 3  ;;  %s521_s10 = sshll.u32 %s864_s27, 1 }
  0x17   : > { %s212_s5 = scalar_lea.vmem %s852_s0, %s519_s28  ;;  %s218_s13 = scalar_lea.vmem %s853_s1, %s521_s10 }
  0x18   : > { %v751_v0 = vld [vmem:[%s212_s5 + $0x10] sm:$0xff]  ;;  %v753_v1 = vld [vmem:[%s212_s5] sm:$0xff]  ;;  %v755_v2 = vld [vmem:[%s212_s5 + $0x18] sm:$0xff]  ;;  %s207_s27 = scalar_lea.vmem [#allocation2], %s517_s20  ;;  %s610_s10 = scalar_lea.vmem %s609_s9, 1024 }
  0x19   : > { %v233_v3 = vsel %vm226_vm0, %v751_v0, 0.0  ;;  %v227_v4 = vsel %vm226_vm0, %v753_v1, 0.0  ;;  %v761_v5 = vld [vmem:[%s212_s5 + $0x8] sm:$0xff]  ;;  %v236_v6 = vsel %vm226_vm0, %v755_v2, 0.0  ;;  %v244_v9 = vmul.f32 %v753_v1, %v753_v1  ;;  %v523_v53 = vld [vmem:[%s218_s13 + $0x3] ss:$0 sm:$0xff] }
  0x1a   : > { %234 = vadd.xlane.f32.xlu1 %v233_v3  ;;  %228 = vadd.xlane.f32.xlu0 %v227_v4  ;;  %v230_v7 = vsel %vm226_vm0, %v761_v5, 0.0  ;;  %v245_v8 = vmul.f32 %v761_v5, %v761_v5  ;;  %v247_v12 = vmul.f32 %v755_v2, %v755_v2  ;;  %v246_v13 = vmul.f32 %v751_v0, %v751_v0  ;;  %v522_v55 = vld [vmem:[%s218_s13 + $0x1] ss:$0 sm:$0xff]  ;;  %v527_v57 = vld [vmem:[%s218_s13 + $0x2] ss:$0 sm:$0xff]  ;;  %s439_s28 = sshll.u32 %s207_s27, 4  ;;  %s801_s28 = int_to_ptr.vmem [resolvable:$true] %s439_s28 }
  0x1b   : > { %v248_v11 = vsel %vm226_vm0, %v244_v9, 0.0  ;;  %v526_v60 = vld [vmem:[%s218_s13] ss:$0 sm:$0xff]  ;;  %v525_v4 = vld [vmem:[%s218_s13 + $0x7] ss:$0 sm:$0xff]  ;;  %s604_s7 = scalar_lea.vmem %s801_s28, 512  ;;  %p611_p0 = scmp.lt.s32.totalorder %s801_s28, %s609_s9 }
  0x1c   : > { %v251_v10 = vsel %vm226_vm0, %v245_v8, 0.0  ;;  %v257_v14 = vsel %vm226_vm0, %v247_v12, 0.0  ;;  %v254_v15 = vsel %vm226_vm0, %v246_v13, 0.0  ;;  %v529_v9 = vld [vmem:[%s218_s13 + $0x6] ss:$0 sm:$0xff]  ;;  %p605_p11 = scmp.ne.s32.totalorder %s801_s28, %s604_s7  ;;  %p612_p1 = scmp.lt.s32.totalorder %s610_s10, %s604_s7 }
  0x1e   : > { %237 = vadd.xlane.f32.xlu1 %v236_v6  ;;  %231 = vadd.xlane.f32.xlu0 %v230_v7  ;;  %v524_v7 = vld [vmem:[%s218_s13 + $0x5] ss:$0 sm:$0xff]  ;;  %p606_p12 = pnand %p605_p11, %p734_p5  ;;  %p613_p2 = por %p612_p1, %p611_p0 }
  0x20   : > { %p607_p13 = pneg %p606_p12 }
  0x22   : > { %252 = vadd.xlane.f32.xlu1 %v251_v10  ;;  %249 = vadd.xlane.f32.xlu0 %v248_v11  ;;  %v528_v11 = vld [vmem:[%s218_s13 + $0x4] ss:$0 sm:$0xff]  ;;  %p614_p3 = pnand %p613_p2, %p607_p13 }
  0x26   : > { %258 = vadd.xlane.f32.xlu1 %v257_v14  ;;  %255 = vadd.xlane.f32.xlu0 %v254_v15 }
  0xa7   : > { %v235_v18 = vpop.xlane.xlu1 %234  ;;  %v229_v19 = vpop.xlane.xlu0 %228 }
  0xa8   : > { %v240_v22 = vmul.f32 0.03125, %v229_v19  ;;  %v242_v24 = vmul.f32 0.03125, %v235_v18 }
  0xaa   : > { %v264_v28 = vmul.f32 %v240_v22, %v240_v22  ;;  %v266_v34 = vmul.f32 %v242_v24, %v242_v24  ;;  %v292_v52 = vsub.f32 %v753_v1, %v240_v22  ;;  %v294_v63 = vsub.f32 %v751_v0, %v242_v24 }
  0xab   : > { %v238_v20 = vpop.xlane.xlu1 %237  ;;  %v232_v21 = vpop.xlane.xlu0 %231 }
  0xac   : > { %v241_v23 = vmul.f32 0.03125, %v232_v21  ;;  %v243_v25 = vmul.f32 0.03125, %v238_v20 }
  0xae   : > { %v265_v29 = vmul.f32 %v241_v23, %v241_v23  ;;  %v267_v35 = vmul.f32 %v243_v25, %v243_v25  ;;  %v293_v50 = vsub.f32 %v761_v5, %v241_v23  ;;  %v295_v59 = vsub.f32 %v755_v2, %v243_v25 }
  0xaf   : > { %v253_v26 = vpop.xlane.xlu1 %252  ;;  %v250_v27 = vpop.xlane.xlu0 %249 }
  0xb0   : > { %v261_v30 = vmul.f32 0.03125, %v253_v26  ;;  %v260_v31 = vmul.f32 0.03125, %v250_v27 }
  0xb2   : > { %v269_v32 = vsub.f32 %v261_v30, %v265_v29  ;;  %v268_v33 = vsub.f32 %v260_v31, %v264_v28 }
  0xb3   : > { %v259_v36 = vpop.xlane.xlu1 %258  ;;  %v256_v37 = vpop.xlane.xlu0 %255 }
  0xb4   : > { %v273_v38 = vmax.f32 %v269_v32, 0.0  ;;  %v272_v39 = vmax.f32 %v268_v33, 0.0  ;;  %v263_v40 = vmul.f32 0.03125, %v259_v36  ;;  %v262_v41 = vmul.f32 0.03125, %v256_v37 }
  0xb6   : > { %v277_v42 = vadd.f32 1e-06, %v273_v38  ;;  %v276_v43 = vadd.f32 1e-06, %v272_v39  ;;  %v271_v44 = vsub.f32 %v263_v40, %v267_v35  ;;  %v270_v45 = vsub.f32 %v262_v41, %v266_v34 }
  0xb8   : > { %596 = vrsqrt.f32 %v277_v42  ;;  %v275_v46 = vmax.f32 %v271_v44, 0.0  ;;  %v274_v47 = vmax.f32 %v270_v45, 0.0 }
  0xb9   : > { %598 = vrsqrt.f32 %v276_v43 }
  0xba   : > { %v279_v48 = vadd.f32 1e-06, %v275_v46  ;;  %v278_v49 = vadd.f32 1e-06, %v274_v47 }
  0xbc   : > { %600 = vrsqrt.f32 %v279_v48 }
  0xbd   : > { %602 = vrsqrt.f32 %v278_v49 }
  0xc2   : > { %v597_v51 = vpop.eup %596 }
  0xc3   : > { %v599_v54 = vpop.eup %598  ;;  %v297_v56 = vmul.f32 %v597_v51, %v293_v50 }
  0xc4   : > { %v296_v58 = vmul.f32 %v599_v54, %v292_v52 }
  0xc5   : > { %v317_v61 = vmul.f32 %v523_v53, %v297_v56 }
  0xc6   : > { %v601_v62 = vpop.eup %600  ;;  %v316_v3 = vmul.f32 %v522_v55, %v296_v58 }
  0xc7   : > { %v603_v6 = vpop.eup %602  ;;  %v337_v5 = vadd.f32 %v527_v57, %v317_v61  ;;  %v299_v1 = vmul.f32 %v601_v62, %v295_v59 }
  0xc8   : > { %v336_v8 = vadd.f32 %v526_v60, %v316_v3  ;;  %v298_v10 = vmul.f32 %v603_v6, %v294_v63 }
  0xc9   : > { %v319_v12 = vmul.f32 %v525_v4, %v299_v1 }
  0xca   : > { %v340_v13 = vpack.c.bf16 %v337_v5, %v336_v8  ;;  %v318_v2 = vmul.f32 %v524_v7, %v298_v10 }
  0xcb   : > { %v339_v14 = vadd.f32 %v529_v9, %v319_v12 }
  0xcc   : > { %549 = vmatprep.mubr.msk.bf16.mxu0 %vm226_vm0, %v340_v13  ;;  %v338_v15 = vadd.f32 %v528_v11, %v318_v2 }
  0xce   : > { %v341_v0 = vpack.c.bf16 %v339_v14, %v338_v15 }
  0xd0   : > { %550 = vmatmul.mubr.msk.bf16.vlgmr.msra.gmra.mrb[0].mxu0 %vm226_vm0, %v341_v0 }
 0x1a3   : > { %v551_v17 = vpop.f32.mrb[0].mxu0 }
 0x1a4   : > { %v414_v18 = vadd.f32 %v551_v17, %v530_v16  ;;  %v405_v19 = vpop.f32.mrb[1].mxu0 }
 0x1a5   : > { %v406_v20 = vadd.f32 %v530_v16, %v405_v19  ;;  %v552_v21 = vpop.f32.mrb[2].mxu0 }
 0x1a6   : > { %423 = vst.msk [vmem:[%s207_s27 + $0x10] sm:$0xff] %vm420_vm1, %v414_v18  ;;  %v417_v22 = vadd.f32 %v552_v21, %v530_v16  ;;  %v408_v23 = vpop.f32.mrb[3].mxu0 }
 0x1a7   : > { %421 = vst.msk [vmem:[%s207_s27] sm:$0xff] %vm420_vm1, %v406_v20  ;;  %v409_v24 = vadd.f32 %v530_v16, %v408_v23 }
 0x1a8   : > { %424 = vst.msk [vmem:[%s207_s27 + $0x18] sm:$0xff] %vm420_vm1, %v417_v22 }
 0x1a9   : > { %422 = vst.msk [vmem:[%s207_s27 + $0x8] sm:$0xff] %vm420_vm1, %v409_v24 }
 0x1aa   : > { %617 = shalt.err (!%p614_p3)
}
 0x1ab   : > { %s618_s11 = scalar_lea.hbm %s806_s6, 512  ;;  %s622_s14 = scalar_lea.hbm %s856_s4, 1024 }
 0x1ac   : > { %p619_p4 = scmp.ne.s32.totalorder %s806_s6, %s618_s11  ;;  %p623_p9 = scmp.lt.u32.totalorder %s806_s6, %s856_s4 }
 0x1ad   : > { %p624_p10 = scmp.lt.u32.totalorder %s622_s14, %s618_s11  ;;  %p626_p12 = scmp.lt.u32.totalorder %s618_s11, %s806_s6 }
 0x1ae   : > { %p620_p7 = pnand %p619_p4, %p734_p5 }
 0x1af   : > { %p625_p11 = por %p624_p10, %p623_p9 }
 0x1b0   : > { %p621_p8 = pneg %p620_p7 }
 0x1b1   : > { %p627_p13 = por %p626_p12, %p625_p11 }
 0x1b3   : > { %p628_p0 = pnand %p627_p13, %p621_p8 }
 0x1b5   : > { %631 = shalt.err (!%p628_p0)
}
 0x1b6   : > { %s669_s23 = smov 128   ;;  %s670_s27 = smov 8  }
 0x1b7   : > { %553 = dma.vmem_to_hbm [thread:$0]  (%p734_p5), %s801_s28, 512, %s806_s6, %s811_s19, %s669_s23, %s669_s23, %s670_s27  }
 0x1b8 PF: > { %p559_p1 = scmp.ge.s32.totalorder %s666_s18, 2  ;;  %s454_s29 = sand.u32 1, %s654_s15  }
 0x1b9   : > { %s455_s30 = scalar_lea.sflag [#allocation3], %s454_s29 }
 0x1ba   : > { %p556_p2 = pnand %p559_p1, %p738_p6 }
 0x1bc   : > { %649 = dma.done.wait (!%p556_p2), %s455_s30, 512  }
 0x1bd   : > { %651 = vsyncadd (!%p556_p2), %s455_s30, 4294966784  ;;  %p14_p3 = scmp.ge.s32.totalorder %s721_s21, 4   ;;  %s859_s15 = smov %s658_s16 }
 0x1be   : > { %s860_s16 = smov %s662_s17  ;;  %s861_s17 = smov %s732_s24 }
 0x1bf   : > { %s862_s18 = smov %s721_s21  ;;  %16 = sbr.rel (!%p14_p3) target bundleno = 3 (0x3), region = 74 }
 0x1c6   :  { %460 = vsyncpa [#allocation3], 1 }
 0x1c7   :  { %462 = vsyncpa [#allocation3 + $0x1], 1 }

</bundles_post_ra>
